<compile_context>
chip_gen: v5e
topology: v5e:2x2
jax: 0.10.0
libtpu: 0.0.40
codegen_flags: <defaults>
</compile_context>

<pallas_src>
import jax
import jax.numpy as jnp
from jax.experimental import pallas as pl
from jax.experimental.pallas import tpu as pltpu


def _round_up(x, m):
    return ((x + m - 1) // m) * m


def _largest_divisor_tile(total, candidates):
    for c in candidates:
        if total % c == 0:
            return c
    return candidates[-1]


def _linear_kernel(x_ref, w_ref, o_ref, acc_ref):
    """One (tm, tn) output tile; K is the reduction grid axis (axis 2).

    x_ref:   [tm, tk]  activation tile (compute dtype, e.g. bf16)
    w_ref:   [tk, tn]  weight tile, pre-staged in [K, N] layout
    o_ref:   [tm, tn]  output tile (activation dtype)
    acc_ref: [tm, tn]  f32 accumulator scratch (persists across the K axis)
    """
    k = pl.program_id(2)

    @pl.when(k == 0)
    def _():
        acc_ref[...] = jnp.zeros_like(acc_ref)

    acc_ref[...] += jnp.dot(
        x_ref[...], w_ref[...], preferred_element_type=jnp.float32
    )

    @pl.when(k == pl.num_programs(2) - 1)
    def _():
        o_ref[...] = acc_ref[...].astype(o_ref.dtype)


class HvacPallas:
    """Pallas equivalent of the `hvac` module: a bias-free linear layer."""

    def __init__(self, weight, compute_dtype=jnp.bfloat16):
        # weight: [output_size, input_size]  (PyTorch nn.Linear layout)
        weight = jnp.asarray(weight)
        self.out_features, self.in_features = weight.shape
        self.compute_dtype = jnp.dtype(compute_dtype)

        # --- K / N tiling decided once (W staging must match) ---------------
        if self.in_features <= 1024:
            self.k_pad = self.in_features          # full-K tile, no x K-pad
            self.tk = self.in_features
        else:
            self.k_pad = _round_up(self.in_features, 128)
            self.tk = _largest_divisor_tile(self.k_pad, (1024, 512, 256, 128))

        self.n_pad = _round_up(self.out_features, 128)
        if self.n_pad <= 1024:
            self.tn = self.n_pad                   # grid_n == 1: x streams once
        else:
            self.tn = _largest_divisor_tile(self.n_pad, (512, 256, 128))

        # --- stage the weight ONCE: cast -> [K, N] -> pad --------------------
        w = weight.astype(self.compute_dtype).T    # [K, N]
        if (self.k_pad != self.in_features) or (self.n_pad != self.out_features):
            w = jnp.pad(
                w,
                ((0, self.k_pad - self.in_features),
                 (0, self.n_pad - self.out_features)),
            )
        self.w_kn = w
        self._weight = weight                      # kept for the fast path

    def __call__(self, x, force_pallas=False):
        lead = x.shape[:-1]
        m = 1
        for d in lead:
            m *= d

        # M tile: native sublane multiple of the compute dtype.
        sub = {4: 8, 2: 16, 1: 32}[self.compute_dtype.itemsize]
        if m <= 512:
            tm = _round_up(max(m, 1), sub)
            m_pad = tm
        else:
            tm = 256                               # >= 2 parallel M blocks (v7x)
            m_pad = _round_up(m, tm)

        grid = (m_pad // tm, self.n_pad // self.tn, self.k_pad // self.tk)

        tiny = (m * self.out_features * self.in_features) < (1 << 21)
        if (not force_pallas) and tiny:
            # Tiny-shape fast path: kernel launch / pad / slice would dominate.
            y = jnp.einsum(
                "...i,oi->...o",
                x.astype(self.compute_dtype),
                self._weight.astype(self.compute_dtype),
                preferred_element_type=jnp.float32,
            )
            return y.astype(x.dtype)

        x2d = x.reshape(m, self.in_features).astype(self.compute_dtype)
        if (m_pad != m) or (self.k_pad != self.in_features):
            x2d = jnp.pad(
                x2d,
                ((0, m_pad - m), (0, self.k_pad - self.in_features)),
            )

        grid_m, grid_n, _ = grid
        out_itemsize = jnp.dtype(x.dtype).itemsize
        bytes_accessed = (
            m_pad * self.k_pad * self.compute_dtype.itemsize * grid_n   # x re-reads
            + self.k_pad * self.n_pad * self.compute_dtype.itemsize * grid_m  # W re-reads
            + m_pad * self.n_pad * out_itemsize                         # output
        )
        cost = pl.CostEstimate(
            flops=2 * m_pad * self.n_pad * self.k_pad,
            transcendentals=0,
            bytes_accessed=bytes_accessed,
        )

        tk, tn = self.tk, self.tn
        out = pl.pallas_call(
            _linear_kernel,
            out_shape=jax.ShapeDtypeStruct((m_pad, self.n_pad), x.dtype),
            grid_spec=pltpu.PrefetchScalarGridSpec(
                num_scalar_prefetch=0,
                grid=grid,
                in_specs=[
                    pl.BlockSpec((tm, tk), lambda i, j, k: (i, k)),  # x tile
                    pl.BlockSpec((tk, tn), lambda i, j, k: (k, j)),  # W tile [K,N]
                ],
                out_specs=pl.BlockSpec((tm, tn), lambda i, j, k: (i, j)),
                scratch_shapes=[pltpu.VMEM((tm, tn), jnp.float32)],
            ),
            compiler_params=pltpu.CompilerParams(
                dimension_semantics=("parallel", "parallel", "arbitrary"),
                vmem_limit_bytes=48 * 1024 * 1024,
            ),
            cost_estimate=cost,
        )(x2d, self.w_kn)

        if (m_pad != m) or (self.n_pad != self.out_features):
            out = out[:m, :self.out_features]
        return out.reshape(*lead, self.out_features)


if __name__ == "__main__":
    # Shapes consistent with the module: pHVAC features -> zone loads.
    batch, seq = 2, 8
    input_size, output_size = 32, 16

    key = jax.random.PRNGKey(0)
    kx, kw = jax.random.split(key)

    x = jax.random.normal(kx, (batch, seq, input_size), dtype=jnp.float32)
    # PyTorch layout: [output_size, input_size].
    weight = (
        jax.random.normal(kw, (output_size, input_size), dtype=jnp.float32) * 0.1
    )

    model = HvacPallas(weight)  # stages W once: bf16, [K, N], padded

    # Exercise the Pallas kernel (the fast path would otherwise handle these
    # tiny demo shapes with XLA's fused dot).
    y = model(x, force_pallas=True)
    y = jax.block_until_ready(y)
    assert y.shape == (batch, seq, output_size)

    # Matched-precision reference: bf16 inputs, f32 accumulation.
    ref_bf16 = jnp.einsum(
        "bsi,oi->bso",
        x.astype(jnp.bfloat16),
        weight.astype(jnp.bfloat16),
        preferred_element_type=jnp.float32,
    ).astype(jnp.float32)
    assert jnp.allclose(y.astype(jnp.float32), ref_bf16, atol=1e-4, rtol=1e-4)

    # Full-precision sanity check (bf16 rounding tolerance).
    ref_f32 = jnp.einsum("bsi,oi->bso", x, weight)
    assert jnp.allclose(y.astype(jnp.float32), ref_f32, atol=5e-2, rtol=5e-2)

    # Fast-path sanity (same math via XLA's fused dot).
    y_fast = jax.block_until_ready(model(x))
    assert jnp.allclose(y_fast.astype(jnp.float32), ref_bf16, atol=1e-4, rtol=1e-4)

    print("KERNEL_OK")
</pallas_src>

<mosaic_0001>
module attributes {stable_mosaic.version = 11 : i64} {
  func.func @_linear_kernel(%arg0: i32, %arg1: i32, %arg2: i32, %arg3: memref<16x32xbf16, #tpu.memory_space<vmem>>, %arg4: memref<32x128xbf16, #tpu.memory_space<vmem>>, %arg5: memref<16x128xf32, #tpu.memory_space<vmem>>, %arg6: memref<16x128xf32, #tpu.memory_space<vmem>>) attributes {dimension_semantics = [#tpu.dimension_semantics<parallel>, #tpu.dimension_semantics<parallel>, #tpu.dimension_semantics<arbitrary>], iteration_bounds = array<i64: 1, 1, 1>, scalar_prefetch = 0 : i64, scratch_operands = 1 : i64, tpu.core_type = #tpu.core_type<tc>, window_params = [{transform_indices = @transform_0, window_bounds = array<i64: 16, 32>}, {transform_indices = @transform_1, window_bounds = array<i64: 32, 128>}, {transform_indices = @transform_2, window_bounds = array<i64: 16, 128>}]} {
    %c0_i32 = arith.constant 0 : i32
    %0 = arith.cmpi eq, %arg2, %c0_i32 : i32
    %1 = arith.extui %0 : i1 to i32
    %c0_i32_0 = arith.constant 0 : i32
    %2 = arith.cmpi ne, %1, %c0_i32_0 : i32
    scf.if %2 {
      %cst_10 = arith.constant 0.000000e+00 : f32
      %12 = vector.broadcast %cst_10 : f32 to vector<16x128xf32>
      %c0_11 = arith.constant 0 : index
      %c0_12 = arith.constant 0 : index
      %13 = vector.load %arg6[%c0_11, %c0_12] : memref<16x128xf32, #tpu.memory_space<vmem>>, vector<16x128xf32>
      tpu.vector_store %arg6[%c0_11, %c0_12], %12 {strides = array<i32>} : memref<16x128xf32, #tpu.memory_space<vmem>>, vector<16x128xf32>,
    } else {
    }
    %c0 = arith.constant 0 : index
    %c0_1 = arith.constant 0 : index
    %3 = vector.load %arg6[%c0, %c0_1] : memref<16x128xf32, #tpu.memory_space<vmem>>, vector<16x128xf32>
    %c0_2 = arith.constant 0 : index
    %c0_3 = arith.constant 0 : index
    %4 = vector.load %arg3[%c0_2, %c0_3] : memref<16x32xbf16, #tpu.memory_space<vmem>>, vector<16x32xbf16>
    %c0_4 = arith.constant 0 : index
    %c0_5 = arith.constant 0 : index
    %5 = vector.load %arg4[%c0_4, %c0_5] : memref<32x128xbf16, #tpu.memory_space<vmem>>, vector<32x128xbf16>
    %cst = arith.constant dense<0.000000e+00> : vector<16x128xf32>
    %6 = tpu.matmul %4, %5, %cst {dimension_numbers = #tpu.dot_dimension_numbers<[1], [0], [0], [1], [0, 0, 1, 1], [], []>} : vector<16x32xbf16>, vector<32x128xbf16>, vector<16x128xf32> -> vector<16x128xf32>
    %7 = arith.addf %3, %6 : vector<16x128xf32>
    %c0_6 = arith.constant 0 : index
    %c0_7 = arith.constant 0 : index
    %8 = vector.load %arg6[%c0_6, %c0_7] : memref<16x128xf32, #tpu.memory_space<vmem>>, vector<16x128xf32>
    tpu.vector_store %arg6[%c0_6, %c0_7], %7 {strides = array<i32>} : memref<16x128xf32, #tpu.memory_space<vmem>>, vector<16x128xf32>,
    %c0_i32_8 = arith.constant 0 : i32
    %9 = arith.cmpi eq, %arg2, %c0_i32_8 : i32
    %10 = arith.extui %9 : i1 to i32
    %c0_i32_9 = arith.constant 0 : i32
    %11 = arith.cmpi ne, %10, %c0_i32_9 : i32
    scf.if %11 {
      %c0_10 = arith.constant 0 : index
      %c0_11 = arith.constant 0 : index
      %12 = vector.load %arg6[%c0_10, %c0_11] : memref<16x128xf32, #tpu.memory_space<vmem>>, vector<16x128xf32>
      %c0_12 = arith.constant 0 : index
      %c0_13 = arith.constant 0 : index
      %13 = vector.load %arg5[%c0_12, %c0_13] : memref<16x128xf32, #tpu.memory_space<vmem>>, vector<16x128xf32>
      tpu.vector_store %arg5[%c0_12, %c0_13], %12 {strides = array<i32>} : memref<16x128xf32, #tpu.memory_space<vmem>>, vector<16x128xf32>,
    } else {
    }
    return
  }
  func.func @transform_0(%arg0: i32, %arg1: i32, %arg2: i32) -> (i32, i32) {
    %c0_i32 = arith.constant 0 : i32
    return %arg0, %arg2 : i32, i32
  }
  func.func @transform_1(%arg0: i32, %arg1: i32, %arg2: i32) -> (i32, i32) {
    %c0_i32 = arith.constant 0 : i32
    return %arg2, %arg1 : i32, i32
  }
  func.func @transform_2(%arg0: i32, %arg1: i32, %arg2: i32) -> (i32, i32) {
    %c0_i32 = arith.constant 0 : i32
    return %arg0, %arg1 : i32, i32
  }
}

</mosaic_0001>

<bundles_post_ra>
// kernel: tpu_custom_call.1
= control target key start
LH: loop header
LB: loop body
LE: loop exit
PB: predicated region body
PF: predicated region fallthrough
CT: control target
= control target key end

     0   :  { %7 = vsyncpa [#allocation4], 0  ;;  %s257_s0 = inlined_call_operand.hbm [shape: bf16[16,32], index: 0, kind: input, shape index: {}]   ;;  %s258_s1 = inlined_call_operand.hbm [shape: bf16[32,128], index: 1, kind: input, shape index: {}]   ;;  %s259_s2 = inlined_call_operand.hbm [shape: f32[16,128], index: 2, kind: output, shape index: {}]  }
   0x1   :  { %8 = vsyncpa [#allocation7], 0 }
   0x2   :  { %9 = vsyncpa [#allocation5], 0  ;;  %s14_s11 = sshll.u32 %s257_s0, 4  ;;  %s226_s12 = smov [#allocation3]   ;;  %s15_s11 = int_to_ptr.hbm [resolvable:$true] %s14_s11 }
   0x3   :  { %s16_s13 = sshll.u32 %s226_s12, 4  ;;  %s27_s16 = sshll.u32 %s258_s1, 4  ;;  %s17_s13 = int_to_ptr.vmem [resolvable:$true] %s16_s13  ;;  %s28_s16 = int_to_ptr.hbm [resolvable:$true] %s27_s16 }
   0x4   :  { %s227_s17 = smov 64   ;;  %s228_s18 = smov 4  }
   0x5   :  { %22 = dma.hbm_to_vmem [thread:$0]  %s15_s11, 128, %s17_s13, [#allocation4], %s227_s17, %s227_s17, %s228_s18  }
   0x6   :  { %s229_s19 = smov [#allocation6]  }
   0x7   :  { %s29_s20 = sshll.u32 %s229_s19, 4  ;;  %s30_s20 = int_to_ptr.vmem [resolvable:$true] %s29_s20 }
   0x8   :  { %35 = dma.hbm_to_vmem [thread:$0]  %s28_s16, 256, %s30_s20, [#allocation7], %s227_s17, %s227_s17, %s228_s18  }
   0x9   :  { %220 = dma.done.wait [#allocation4], 128  }
   0xa   :  { %221 = vsyncadd [#allocation4], 4294967168 }
   0xb   :  { %222 = dma.done.wait [#allocation7], 256  }
   0xc   :  { %223 = vsyncadd [#allocation7], 4294967040  ;;  %v140_v0 = vld [vmem:[#allocation6 + $0x8] sm:$0xff]  ;;  %v139_v1 = vld [vmem:[#allocation6] sm:$0xff]  ;;  %vm76_vm0 = vcmask 261120   ;;  %s230_s0 = smov [#allocation8]  }
   0xd   :  { %86 = vmatpush.bf16.msra.mxu0 %v140_v0  ;;  %v138_v2 = vld [vmem:[#allocation3] sm:$0xff]  ;;  %s109_s1 = sshll.u32 %s230_s0, 4  ;;  %s111_s23 = sshll.u32 %s259_s2, 4  ;;  %s110_s1 = int_to_ptr.vmem [resolvable:$true] %s109_s1  ;;  %s112_s23 = int_to_ptr.hbm [resolvable:$true] %s111_s23 }
   0xe   :  { %s231_s24 = smov 128   ;;  %s232_s25 = smov 8  }
  0x11   :  { %87 = vmatpush.bf16.msra.mxu0 %v139_v1 }
  0x14   :  { %137 = vmatmul.msk.bf16.vlgmr.msra.gmra.mxu0 %vm76_vm0, %v138_v2 }
  0x91   :  { %v89_v3 = vpop.f32.mrf.mxu0 }
  0x92   :  { %103 = vst [vmem:[#allocation8] sm:$0xff] %v89_v3 }
  0x99   :  { %v91_v4 = vpop.f32.mrf.mxu0 }
  0x9a   :  { %104 = vst [vmem:[#allocation8 + $0x8] sm:$0xff] %v91_v4 }
  0x9b   :  { %117 = dma.vmem_to_hbm [thread:$0]  %s110_s1, 256, %s112_s23, [#allocation5], %s231_s24, %s231_s24, %s232_s25  }
  0x9c   :  { %224 = dma.done.wait [#allocation5], 256  }
  0x9d   :  { %225 = vsyncadd [#allocation5], 4294967040 }
  0x9e   :  { %122 = vsyncpa [#allocation4], 1 }
  0x9f   :  { %123 = vsyncpa [#allocation7], 1 }
  0xa0   :  { %124 = vsyncpa [#allocation5], 1 }

</bundles_post_ra>
